<compile_context>
chip_gen: v5e
topology: v5e:2x2
jax: 0.10.0
libtpu: 0.0.40
codegen_flags: <defaults>
</compile_context>

<pallas_src>
import math

import jax
import jax.numpy as jnp
from jax.experimental import pallas as pl
from jax.experimental.pallas import tpu as pltpu


# (TB, 256) f32 slab = 1 MiB; 2 io arrays x 2 buffers + 256 KiB constant ~ 4.25 MiB VMEM.
_MAX_BLOCK_ROWS = 1024


def _fused_kernel(x_ref, m_ref, o_ref):
    # x_ref: (TB, K*K) lane-dense slab of flattened feature matrices.
    # m_ref: (K*K, K*K) precomputed weight-derived constant (VMEM-resident).
    # o_ref: (TB, K*K) lane-dense output slab.
    y = jnp.dot(x_ref[...], m_ref[...], preferred_element_type=jnp.float32)
    o_ref[...] = jnp.maximum(y * jnp.float32(0.1), jnp.float32(0.0))


def _build_fused_matrix(kernel):
    """Fold diag(XW)+diag(WX) + outer-sum into one (K^2, K^2) matrix M.

    d[r]        = diag(X W)[r] + diag(W X)[r]
    out[r, c]   = d[r] + d[c]
    out_flat    = x_flat @ M,   M = C @ D
      C[(a,b),r] = [a==r] * W[b, r] + [b==r] * W[r, a]   # (K^2, K)
      D[r,(p,q)] = [r==p] + [r==q]                       # (K,   K^2)
    """
    k = kernel.shape[0]
    eye = jnp.eye(k, dtype=jnp.float32)
    w = kernel.astype(jnp.float32)
    c3 = jnp.einsum("ar,br->abr", eye, w) + jnp.einsum("br,ra->abr", eye, w)
    c = c3.reshape(k * k, k)
    d3 = eye[:, :, None] + eye[:, None, :]      # indices (r, p, q)
    d = d3.reshape(k, k * k)
    return c @ d                                # (K^2, K^2)


@jax.jit
def convolution_layer_forward(input_feature, kernel):
    n, k, k2 = input_feature.shape
    assert k == k2 and kernel.shape == (k, k)
    kk = k * k

    x_flat = input_feature.astype(jnp.float32).reshape(n, kk)
    m = _build_fused_matrix(kernel)

    # Block rows: full batch if small (block == full dim satisfies tiling rule),
    # otherwise 1024 (multiple of 8); grid handles the partial last block.
    tb = n if n <= _MAX_BLOCK_ROWS else _MAX_BLOCK_ROWS
    grid = (pl.cdiv(n, tb),)

    out_flat = pl.pallas_call(
        _fused_kernel,
        out_shape=jax.ShapeDtypeStruct((n, kk), jnp.float32),
        grid_spec=pltpu.PrefetchScalarGridSpec(
            num_scalar_prefetch=0,
            grid=grid,
            in_specs=[
                pl.BlockSpec((tb, kk), lambda i: (i, 0)),
                pl.BlockSpec((kk, kk), lambda i: (0, 0)),   # constant, VMEM-resident
            ],
            out_specs=pl.BlockSpec((tb, kk), lambda i: (i, 0)),
        ),
        compiler_params=pltpu.CompilerParams(
            dimension_semantics=("parallel",),
        ),
    )(x_flat, m)

    return out_flat.reshape(n, k, k)


def reference_forward(input_feature, kernel):
    # Pure-JAX reference mirroring the PyTorch loop nest exactly.
    s1 = jnp.einsum("nij,jk->nik", input_feature, kernel)
    s2 = jnp.einsum("ij,njk->nik", kernel, input_feature)
    d = jnp.einsum("nii->ni", s1) + jnp.einsum("nii->ni", s2)  # (N, K)
    out = d[:, :, None] + d[:, None, :]
    return jax.nn.relu(out * 0.1)


if __name__ == "__main__":
    kernel_size = 16
    net_sum = 4

    key = jax.random.PRNGKey(0)
    k_key, x_key = jax.random.split(key)

    # Deterministic parameter init matching reset_parameters():
    #   uniform(-stdv, stdv), stdv = 1/sqrt(kernel_size)
    stdv = 1.0 / math.sqrt(kernel_size)
    kernel = jax.random.uniform(
        k_key, (kernel_size, kernel_size), dtype=jnp.float32,
        minval=-stdv, maxval=stdv)

    input_feature = jax.random.normal(
        x_key, (net_sum, kernel_size, kernel_size), dtype=jnp.float32)

    out = convolution_layer_forward(input_feature, kernel)
    out = jax.block_until_ready(out)

    ref = reference_forward(input_feature, kernel)
    assert out.shape == (net_sum, kernel_size, kernel_size)
    assert jnp.allclose(out, ref, atol=1e-5, rtol=1e-5), "mismatch vs reference"

    print("KERNEL_OK")
</pallas_src>

<mosaic_0001>
module attributes {stable_mosaic.version = 11 : i64} {
  func.func @_fused_kernel(%arg0: i32, %arg1: memref<4x256xf32, #tpu.memory_space<vmem>>, %arg2: memref<256x256xf32, #tpu.memory_space<vmem>>, %arg3: memref<4x256xf32, #tpu.memory_space<vmem>>) attributes {dimension_semantics = [#tpu.dimension_semantics<parallel>], iteration_bounds = array<i64: 1>, scalar_prefetch = 0 : i64, scratch_operands = 0 : i64, tpu.core_type = #tpu.core_type<tc>, window_params = [{transform_indices = @transform_0, window_bounds = array<i64: 4, 256>}, {pipeline_mode = #tpu.pipeline_mode<synchronous>, transform_indices = @transform_1, window_bounds = array<i64: 256, 256>}, {transform_indices = @transform_2, window_bounds = array<i64: 4, 256>}]} {
    %c0 = arith.constant 0 : index
    %c0_0 = arith.constant 0 : index
    %0 = vector.load %arg1[%c0, %c0_0] : memref<4x256xf32, #tpu.memory_space<vmem>>, vector<4x256xf32>
    %c0_1 = arith.constant 0 : index
    %c0_2 = arith.constant 0 : index
    %1 = vector.load %arg2[%c0_1, %c0_2] : memref<256x256xf32, #tpu.memory_space<vmem>>, vector<256x256xf32>
    %cst = arith.constant dense<0.000000e+00> : vector<4x256xf32>
    %2 = tpu.matmul %0, %1, %cst {dimension_numbers = #tpu.dot_dimension_numbers<[1], [0], [0], [1], [0, 0, 1, 1], [], []>} : vector<4x256xf32>, vector<256x256xf32>, vector<4x256xf32> -> vector<4x256xf32>
    %cst_3 = arith.constant 1.000000e-01 : f32
    %3 = vector.broadcast %cst_3 : f32 to vector<4x256xf32>
    %4 = arith.mulf %2, %3 : vector<4x256xf32>
    %cst_4 = arith.constant 0.000000e+00 : f32
    %5 = vector.broadcast %cst_4 : f32 to vector<4x256xf32>
    %6 = arith.maximumf %4, %5 : vector<4x256xf32>
    %c0_5 = arith.constant 0 : index
    %c0_6 = arith.constant 0 : index
    %7 = vector.load %arg3[%c0_5, %c0_6] : memref<4x256xf32, #tpu.memory_space<vmem>>, vector<4x256xf32>
    tpu.vector_store %arg3[%c0_5, %c0_6], %6 {strides = array<i32>} : memref<4x256xf32, #tpu.memory_space<vmem>>, vector<4x256xf32>,
    return
  }
  func.func @transform_0(%arg0: i32) -> (i32, i32) {
    %c0_i32 = arith.constant 0 : i32
    %c0_i32_0 = arith.constant 0 : i32
    return %arg0, %c0_i32 : i32, i32
  }
  func.func @transform_1(%arg0: i32) -> (i32, i32) {
    %c0_i32 = arith.constant 0 : i32
    %c0_i32_0 = arith.constant 0 : i32
    %c0_i32_1 = arith.constant 0 : i32
    return %c0_i32, %c0_i32_0 : i32, i32
  }
  func.func @transform_2(%arg0: i32) -> (i32, i32) {
    %c0_i32 = arith.constant 0 : i32
    %c0_i32_0 = arith.constant 0 : i32
    return %arg0, %c0_i32 : i32, i32
  }
}

</mosaic_0001>

<bundles_post_ra>
// kernel: convolution_layer_forward.1
= control target key start
LH: loop header
LB: loop body
LE: loop exit
PB: predicated region body
PF: predicated region fallthrough
CT: control target
= control target key end

     0   :  { %vm169_vm0 = vcmask 1043456   ;;  %s390_s1 = inlined_call_operand.vmem [shape: f32[256,256], index: 1, kind: input, shape index: {}]   ;;  %s391_s0 = inlined_call_operand.vmem [shape: f32[4,256], index: 0, kind: input, shape index: {}]   ;;  %s392_s2 = inlined_call_operand.vmem [shape: f32[4,256], index: 2, kind: output, shape index: {}]  }
   0x1   :  { %v43_v0 = vld [vmem:[%s390_s1 + $0xf8] sm:$0xff]  ;;  %v41_v2 = vld [vmem:[%s390_s1 + $0xe8] sm:$0xff]  ;;  %v42_v6 = vld [vmem:[%s390_s1 + $0xf0] sm:$0xff] }
   0x2   :  { %v75_v1 = vld [vmem:[%s390_s1 + $0x1f8] sm:$0xff]  ;;  %122 = vmatpush.msra.mxu2 %v43_v0  ;;  %v73_v3 = vld [vmem:[%s390_s1 + $0x1e8] sm:$0xff]  ;;  %v74_v8 = vld [vmem:[%s390_s1 + $0x1f0] sm:$0xff]  ;;  %82 = vmatpush.msra.mxu0 %v42_v6 }
   0x3   :  { %142 = vmatpush.msra.mxu3 %v75_v1  ;;  %v39_v4 = vld [vmem:[%s390_s1 + $0xd8] sm:$0xff]  ;;  %v37_v7 = vld [vmem:[%s390_s1 + $0xc8] sm:$0xff]  ;;  %102 = vmatpush.msra.mxu1 %v74_v8  ;;  %v40_v10 = vld [vmem:[%s390_s1 + $0xe0] sm:$0xff] }
   0x4   :  { %v71_v5 = vld [vmem:[%s390_s1 + $0x1d8] sm:$0xff]  ;;  %123 = vmatpush.msra.mxu2 %v41_v2  ;;  %v69_v9 = vld [vmem:[%s390_s1 + $0x1c8] sm:$0xff]  ;;  %v72_v11 = vld [vmem:[%s390_s1 + $0x1e0] sm:$0xff]  ;;  %83 = vmatpush.msra.mxu0 %v40_v10 }
   0x5   :  { %143 = vmatpush.msra.mxu3 %v73_v3  ;;  %v38_v12 = vld [vmem:[%s390_s1 + $0xd0] sm:$0xff]  ;;  %v35_v14 = vld [vmem:[%s390_s1 + $0xb8] sm:$0xff]  ;;  %103 = vmatpush.msra.mxu1 %v72_v11  ;;  %v36_v16 = vld [vmem:[%s390_s1 + $0xc0] sm:$0xff] }
   0x6   :  { %124 = vmatpush.msra.mxu2 %v39_v4  ;;  %v70_v13 = vld [vmem:[%s390_s1 + $0x1d0] sm:$0xff]  ;;  %v67_v15 = vld [vmem:[%s390_s1 + $0x1b8] sm:$0xff]  ;;  %v68_v17 = vld [vmem:[%s390_s1 + $0x1c0] sm:$0xff]  ;;  %84 = vmatpush.msra.mxu0 %v38_v12 }
   0x7   :  { %144 = vmatpush.msra.mxu3 %v71_v5  ;;  %v33_v18 = vld [vmem:[%s390_s1 + $0xa8] sm:$0xff]  ;;  %104 = vmatpush.msra.mxu1 %v70_v13  ;;  %v34_v20 = vld [vmem:[%s390_s1 + $0xb0] sm:$0xff]  ;;  %v31_v22 = vld [vmem:[%s390_s1 + $0x98] sm:$0xff] }
   0x8   :  { %125 = vmatpush.msra.mxu2 %v37_v7  ;;  %v65_v19 = vld [vmem:[%s390_s1 + $0x1a8] sm:$0xff]  ;;  %v66_v21 = vld [vmem:[%s390_s1 + $0x1b0] sm:$0xff]  ;;  %v63_v23 = vld [vmem:[%s390_s1 + $0x198] sm:$0xff]  ;;  %85 = vmatpush.msra.mxu0 %v36_v16 }
   0x9   :  { %145 = vmatpush.msra.mxu3 %v69_v9  ;;  %105 = vmatpush.msra.mxu1 %v68_v17  ;;  %v32_v24 = vld [vmem:[%s390_s1 + $0xa0] sm:$0xff]  ;;  %v29_v26 = vld [vmem:[%s390_s1 + $0x88] sm:$0xff]  ;;  %v30_v28 = vld [vmem:[%s390_s1 + $0x90] sm:$0xff] }
   0xa   :  { %126 = vmatpush.msra.mxu2 %v35_v14  ;;  %v64_v25 = vld [vmem:[%s390_s1 + $0x1a0] sm:$0xff]  ;;  %v61_v27 = vld [vmem:[%s390_s1 + $0x188] sm:$0xff]  ;;  %86 = vmatpush.msra.mxu0 %v34_v20  ;;  %v62_v29 = vld [vmem:[%s390_s1 + $0x190] sm:$0xff] }
   0xb   :  { %146 = vmatpush.msra.mxu3 %v67_v15  ;;  %106 = vmatpush.msra.mxu1 %v66_v21  ;;  %v27_v30 = vld [vmem:[%s390_s1 + $0x78] sm:$0xff]  ;;  %v28_v32 = vld [vmem:[%s390_s1 + $0x80] sm:$0xff]  ;;  %v25_v34 = vld [vmem:[%s390_s1 + $0x68] sm:$0xff] }
   0xc   :  { %127 = vmatpush.msra.mxu2 %v33_v18  ;;  %v59_v31 = vld [vmem:[%s390_s1 + $0x178] sm:$0xff]  ;;  %87 = vmatpush.msra.mxu0 %v32_v24  ;;  %v60_v33 = vld [vmem:[%s390_s1 + $0x180] sm:$0xff]  ;;  %v57_v35 = vld [vmem:[%s390_s1 + $0x168] sm:$0xff] }
   0xd   :  { %147 = vmatpush.msra.mxu3 %v65_v19  ;;  %107 = vmatpush.msra.mxu1 %v64_v25  ;;  %v26_v36 = vld [vmem:[%s390_s1 + $0x70] sm:$0xff]  ;;  %v23_v38 = vld [vmem:[%s390_s1 + $0x58] sm:$0xff]  ;;  %v11_v40 = vld [vmem:[%s391_s0] sm:$0xff] }
   0xe   :  { %128 = vmatpush.msra.mxu2 %v31_v22  ;;  %88 = vmatpush.msra.mxu0 %v30_v28  ;;  %v58_v37 = vld [vmem:[%s390_s1 + $0x170] sm:$0xff]  ;;  %v55_v39 = vld [vmem:[%s390_s1 + $0x158] sm:$0xff]  ;;  %v24_v41 = vld [vmem:[%s390_s1 + $0x60] sm:$0xff]  ;;  %77 = vst [vmem:[#allocation1] ss:$2 sm:$0xff] %v11_v40 }
   0xf   :  { %148 = vmatpush.msra.mxu3 %v63_v23  ;;  %108 = vmatpush.msra.mxu1 %v62_v29  ;;  %v56_v42 = vld [vmem:[%s390_s1 + $0x160] sm:$0xff]  ;;  %v21_v43 = vld [vmem:[%s390_s1 + $0x48] sm:$0xff]  ;;  %v22_v45 = vld [vmem:[%s390_s1 + $0x50] sm:$0xff] }
  0x10   :  { %129 = vmatpush.msra.mxu2 %v29_v26  ;;  %89 = vmatpush.msra.mxu0 %v28_v32  ;;  %v53_v44 = vld [vmem:[%s390_s1 + $0x148] sm:$0xff]  ;;  %v54_v46 = vld [vmem:[%s390_s1 + $0x150] sm:$0xff]  ;;  %v19_v47 = vld [vmem:[%s390_s1 + $0x38] sm:$0xff] }
  0x11   :  { %149 = vmatpush.msra.mxu3 %v61_v27  ;;  %109 = vmatpush.msra.mxu1 %v60_v33  ;;  %v51_v48 = vld [vmem:[%s390_s1 + $0x138] sm:$0xff]  ;;  %v20_v49 = vld [vmem:[%s390_s1 + $0x40] sm:$0xff]  ;;  %v17_v51 = vld [vmem:[%s390_s1 + $0x28] sm:$0xff] }
  0x12   :  { %130 = vmatpush.msra.mxu2 %v27_v30  ;;  %90 = vmatpush.msra.mxu0 %v26_v36  ;;  %v52_v50 = vld [vmem:[%s390_s1 + $0x140] sm:$0xff]  ;;  %v49_v52 = vld [vmem:[%s390_s1 + $0x128] sm:$0xff]  ;;  %v18_v53 = vld [vmem:[%s390_s1 + $0x30] sm:$0xff] }
  0x13   :  { %150 = vmatpush.msra.mxu3 %v59_v31  ;;  %110 = vmatpush.msra.mxu1 %v58_v37  ;;  %v50_v54 = vld [vmem:[%s390_s1 + $0x130] sm:$0xff]  ;;  %v15_v55 = vld [vmem:[%s390_s1 + $0x18] sm:$0xff]  ;;  %v16_v57 = vld [vmem:[%s390_s1 + $0x20] sm:$0xff] }
  0x14   :  { %131 = vmatpush.msra.mxu2 %v25_v34  ;;  %91 = vmatpush.msra.mxu0 %v24_v41  ;;  %v47_v56 = vld [vmem:[%s390_s1 + $0x118] sm:$0xff]  ;;  %v48_v58 = vld [vmem:[%s390_s1 + $0x120] sm:$0xff]  ;;  %v13_v59 = vld [vmem:[%s390_s1 + $0x8] sm:$0xff] }
  0x15   :  { %151 = vmatpush.msra.mxu3 %v57_v35  ;;  %111 = vmatpush.msra.mxu1 %v56_v42  ;;  %v45_v60 = vld [vmem:[%s390_s1 + $0x108] sm:$0xff]  ;;  %v78_v61 = vld.sshfl [vmem:[#allocation1] sm:$0xff pattern:$0x75316420]  ;;  %v14_v63 = vld [vmem:[%s390_s1 + $0x10] sm:$0xff] }
  0x16   :  { %132 = vmatpush.msra.mxu2 %v23_v38  ;;  %92 = vmatpush.msra.mxu0 %v22_v45  ;;  %v79_v62 = vld.sshfl [vmem:[#allocation1 + $0x8] sm:$0xff pattern:$0x75316420]  ;;  %v46_v0 = vld [vmem:[%s390_s1 + $0x110] sm:$0xff]  ;;  %v12_v1 = vld [vmem:[%s390_s1] sm:$0xff] }
  0x17   :  { %152 = vmatpush.msra.mxu3 %v55_v39  ;;  %112 = vmatpush.msra.mxu1 %v54_v46  ;;  %v44_v2 = vld [vmem:[%s390_s1 + $0x100] sm:$0xff] }
  0x18   :  { %133 = vmatpush.msra.mxu2 %v21_v43  ;;  %93 = vmatpush.msra.mxu0 %v20_v49 }
  0x19   :  { %153 = vmatpush.msra.mxu3 %v53_v44  ;;  %113 = vmatpush.msra.mxu1 %v52_v50 }
  0x1a   :  { %134 = vmatpush.msra.mxu2 %v19_v47  ;;  %94 = vmatpush.msra.mxu0 %v18_v53 }
  0x1b   :  { %154 = vmatpush.msra.mxu3 %v51_v48  ;;  %114 = vmatpush.msra.mxu1 %v50_v54 }
  0x1c   :  { %135 = vmatpush.msra.mxu2 %v17_v51  ;;  %95 = vmatpush.msra.mxu0 %v16_v57 }
  0x1d   :  { %155 = vmatpush.msra.mxu3 %v49_v52  ;;  %115 = vmatpush.msra.mxu1 %v48_v58 }
  0x1e   :  { %136 = vmatpush.msra.mxu2 %v15_v55  ;;  %96 = vmatpush.msra.mxu0 %v14_v63 }
  0x1f   :  { %156 = vmatpush.msra.mxu3 %v47_v56  ;;  %116 = vmatpush.msra.mxu1 %v46_v0 }
  0x20   :  { %137 = vmatpush.msra.mxu2 %v13_v59  ;;  %97 = vmatpush.msra.mxu0 %v12_v1 }
  0x21   :  { %157 = vmatpush.msra.mxu3 %v45_v60  ;;  %138 = vmatmul.f32.vlgmr.msra.gmra.mxu2 %v78_v61 }
  0x22   :  { %158 = vmatmul.f32.vlgmr.msra.gmra.mxu3 %v79_v62  ;;  %117 = vmatpush.msra.mxu1 %v44_v2 }
  0x23   :  { %98 = vmatmul.f32.vlgmr.msra.gmra.mxu0 %v78_v61  ;;  %118 = vmatmul.f32.vlgmr.msra.gmra.mxu1 %v79_v62 }
  0xa0   :  { %v99_v3 = vpop.f32.mrf.mxu0  ;;  %v119_v4 = vpop.f32.mrf.mxu1 }
  0xa1   :  { %v120_v5 = vadd.f32 %v119_v4, %v99_v3 }
  0xa3   :  { %v162_v9 = vmul.f32 0.1, %v120_v5 }
  0xa4   :  { %v139_v6 = vpop.f32.mrf.mxu2 }
  0xa5   :  { %v159_v7 = vpop.f32.mrf.mxu3  ;;  %v164_v12 = vmax.f32 %v162_v9, 0.0 }
  0xa6   :  { %v160_v8 = vadd.f32 %v159_v7, %v139_v6 }
  0xa8   :  { %v163_v10 = vmul.f32 0.1, %v160_v8 }
  0xaa   :  { %v165_v11 = vmax.f32 %v163_v10, 0.0 }
  0xac   :  { %v168_v13 = vrot.slane %v165_v11, 4 }
  0xae   :  { %v170_v14 = vsel %vm169_vm0, %v164_v12, %v168_v13 }
  0xaf   :  { %172 = vst [vmem:[%s392_s2] sm:$0xff] %v170_v14 }

</bundles_post_ra>
